<compile_context>
chip_gen: v7x
topology: tpu7x:2x2x1
jax: 0.10.0
libtpu: 0.0.40
codegen_flags: <defaults>
</compile_context>

<pallas_src>
import functools

import numpy as np
import jax
import jax.numpy as jnp
from jax.experimental import pallas as pl
from jax.experimental.pallas import tpu as pltpu


def _ib_kernel(xin_ref, w1_ref, sh1_ref, dw_ref, sh2_ref, w3_ref, sh3_ref,
               wmask_ref, out_ref, *, width):
    """One (batch, row-strip) tile per grid step (channel-major, flat spatial).

    xin_ref  : (Cin,  (TH+2)*W)  input strip + 1-row halo on each side
    w1_ref   : (Cmid, Cin)       1x1 conv1 weight, BN1 scale folded in
    sh1_ref  : (Cmid, 1)         BN1 shift (conv1 bias folded in)
    dw_ref   : (Cmid, 9)         depthwise 3x3 taps (col = kh*3+kw), BN2 scale in
    sh2_ref  : (Cmid, 1)         BN2 shift
    w3_ref   : (Cout, Cmid)      1x1 conv3 weight, BN3 scale folded in
    sh3_ref  : (Cout, 1)         BN3 shift (conv3 bias folded in)
    wmask_ref: (2, TH*W)         {left, right} W-border keep masks (1.0 / 0.0)
    out_ref  : (Cout, TH*W)      output strip (lane-dense store)
    """
    W = width
    Cout, M = out_ref.shape            # M  = TH * W
    Cin, Mp = xin_ref.shape            # Mp = (TH + 2) * W
    Cmid = w1_ref.shape[0]

    # ---- conv1 (1x1, BN1 scale folded) + shift + ReLU -----------------------
    # GEMM with spatial on the MXU N / lane axis: (Cmid, Cin) @ (Cin, Mp).
    xs = xin_ref[...]
    h1 = jnp.dot(w1_ref[...], xs, preferred_element_type=jnp.float32)
    h1 = jnp.maximum(h1 + sh1_ref[...], 0.0)                    # (Cmid, Mp)

    # Zero the halo rows only where they coincide with the zero-padded image
    # border (conv2 zero-pads the *activation*; a zero input row would give
    # relu(sh1) != 0 after conv1).  Single select, gated on first/last strip.
    p = jax.lax.broadcasted_iota(jnp.int32, (1, Mp), 1)
    not_first = pl.program_id(1) > 0
    not_last = pl.program_id(1) < pl.num_programs(1) - 1
    keep = (not_first | (p >= W)) & (not_last | (p < Mp - W))
    h1 = jnp.where(keep, h1, 0.0)

    # ---- depthwise 3x3 (pad=1, BN2 scale folded) + shift + ReLU -------------
    # Pad one zero column on each side; tap (kh, kw) then reads the static
    # lane window h1p[:, kh*W + kw : kh*W + kw + M].  Cross-row wrap at the
    # W border is killed by the precomputed keep masks (kw=0 / kw=2 groups).
    taps = dw_ref[...]                                           # (Cmid, 9)
    zcol = jnp.zeros((Cmid, 1), jnp.float32)
    h1p = jnp.concatenate([zcol, h1, zcol], axis=1)              # (Cmid, Mp+2)

    def tap_sum(kw):                    # sum over kh of tap (kh, kw)
        t = h1p[:, kw:kw + M] * taps[:, kw:kw + 1]
        t = t + h1p[:, W + kw:W + kw + M] * taps[:, 3 + kw:4 + kw]
        t = t + h1p[:, 2 * W + kw:2 * W + kw + M] * taps[:, 6 + kw:7 + kw]
        return t

    acc = tap_sum(0) * wmask_ref[0:1, :]          # taps seeing column w-1
    acc = acc + tap_sum(1)                        # taps seeing column w
    acc = acc + tap_sum(2) * wmask_ref[1:2, :]    # taps seeing column w+1
    h2 = jnp.maximum(acc + sh2_ref[...], 0.0)                    # (Cmid, M)

    # ---- conv3 (1x1, BN3 scale folded) + shift ------------------------------
    h3 = jnp.dot(w3_ref[...], h2.astype(w3_ref.dtype),
                 preferred_element_type=jnp.float32)
    h3 = h3 + sh3_ref[...]                                       # (Cout, M)

    # ---- residual add (identity = non-halo rows of the input strip) + ReLU --
    ident = xin_ref[:, W:W + M].astype(jnp.float32)              # (Cin, M)
    out_ref[...] = jnp.maximum(h3 + ident, 0.0).astype(out_ref.dtype)


def _pick_strip_rows(H, W, Cmid, target_elems=2048, interm_budget=6 << 20):
    """Choose the strip height TH.

    TH must divide H, and (unless TH == H) TH*W must be a multiple of 128 so
    the output block is BlockSpec-legal and the store stays lane-dense.
    Prefers the smallest strip with TH*W >= target_elems whose f32
    intermediates fit the budget; otherwise the largest strip that fits;
    never degrades to pathological TH=1 strips for awkward H.
    """
    cands = [th for th in range(1, H + 1)
             if H % th == 0 and ((th * W) % 128 == 0 or th == H)]

    def interm_bytes(th):
        return 6 * Cmid * (th + 2) * W * 4

    good = [th for th in cands
            if th * W >= target_elems and interm_bytes(th) <= interm_budget]
    if good:
        return min(good)
    fits = [th for th in cands if interm_bytes(th) <= interm_budget]
    return max(fits) if fits else min(cands)


def inverse_bottleneck_dwck5(x_nchw, params, eps=1e-5, strip_rows=None,
                             matmul_dtype=jnp.float32):
    """InverseBottleneckDwcK5 forward (stride=1, dilation=1, eval-mode BN).

    x_nchw: (B, C, H, W) float32.  Returns (B, C, H, W) float32.
    matmul_dtype=jnp.bfloat16 runs both 1x1 GEMMs (and the input slabs) in
    bf16 — beneficial on v5e/v6e/v7x MXUs; elementwise math stays f32.
    """
    (w1, b1, g1, be1, m1, v1,
     wdw, g2, be2, m2, v2,
     w3, b3, g3, be3, m3, v3) = params

    B, Cin, H, W = x_nchw.shape
    Cmid = w1.shape[0]
    Cout = w3.shape[0]
    assert Cin == Cout, "identity path requires inplanes == planes"

    if strip_rows is None:
        TH = _pick_strip_rows(H, W, Cmid)
    else:
        TH = strip_rows
        assert H % TH == 0 and (TH == H or (TH * W) % 128 == 0)
    S = H // TH
    M = TH * W
    Mp = (TH + 2) * W

    # --- glue: BN folding (eval mode), channel-major weight layout -----------
    f32 = jnp.float32
    s1 = g1 / jnp.sqrt(v1 + eps)
    s2 = g2 / jnp.sqrt(v2 + eps)
    s3 = g3 / jnp.sqrt(v3 + eps)

    w1_k = (w1[:, :, 0, 0] * s1[:, None]).astype(matmul_dtype)     # (Cmid, Cin)
    w3_k = (w3[:, :, 0, 0] * s3[:, None]).astype(matmul_dtype)     # (Cout, Cmid)
    dw_k = (wdw[:, 0].reshape(Cmid, 9) * s2[:, None]).astype(f32)  # (Cmid, 9)

    sh1 = (s1 * (b1 - m1) + be1).reshape(Cmid, 1).astype(f32)
    sh2 = (be2 - s2 * m2).reshape(Cmid, 1).astype(f32)
    sh3 = (s3 * (b3 - m3) + be3).reshape(Cout, 1).astype(f32)

    # W-border keep masks for the depthwise taps (host-built constants).
    col = np.arange(M, dtype=np.int64) % W
    wmask = jnp.asarray(
        np.stack([(col != 0), (col != W - 1)]).astype(np.float32))  # (2, M)

    # --- per-strip input slabs (strip + 1-row halo), spatially flattened -----
    # Duplicating the two halo rows per strip (instead of a whole VMEM-resident
    # image) bounds VMEM on v7x and avoids dynamic lane-dim slicing; the cast
    # to matmul_dtype happens once here, not per strip inside the kernel.
    x_pad = jnp.pad(x_nchw, ((0, 0), (0, 0), (1, 1), (0, 0)))       # (B,C,H+2,W)
    strips = [x_pad[:, :, s * TH:s * TH + TH + 2, :] for s in range(S)]
    x_strips = (jnp.stack(strips, axis=1)
                .reshape(B, S, Cin, Mp).astype(matmul_dtype))       # (B,S,Cin,Mp)

    itemsize = jnp.dtype(matmul_dtype).itemsize
    need = (2 * (Cin * Mp * itemsize + Cout * M * 4)
            + 8 * Cmid * Mp * 4 + (1 << 20))
    vmem_limit = int(min(64 << 20, max(32 << 20, 2 * need)))

    kernel = functools.partial(_ib_kernel, width=W)
    out_flat = pl.pallas_call(
        kernel,
        out_shape=jax.ShapeDtypeStruct((B, Cout, H * W), jnp.float32),
        grid_spec=pltpu.PrefetchScalarGridSpec(
            num_scalar_prefetch=0,
            grid=(B, S),
            in_specs=[
                pl.BlockSpec((None, None, Cin, Mp), lambda b, s: (b, s, 0, 0)),
                pl.BlockSpec((Cmid, Cin), lambda b, s: (0, 0)),
                pl.BlockSpec((Cmid, 1), lambda b, s: (0, 0)),
                pl.BlockSpec((Cmid, 9), lambda b, s: (0, 0)),
                pl.BlockSpec((Cmid, 1), lambda b, s: (0, 0)),
                pl.BlockSpec((Cout, Cmid), lambda b, s: (0, 0)),
                pl.BlockSpec((Cout, 1), lambda b, s: (0, 0)),
                pl.BlockSpec((2, M), lambda b, s: (0, 0)),
            ],
            out_specs=pl.BlockSpec((None, Cout, M), lambda b, s: (b, 0, s)),
        ),
        compiler_params=pltpu.CompilerParams(
            dimension_semantics=("parallel", "parallel"),
            vmem_limit_bytes=vmem_limit,
        ),
    )(x_strips, w1_k, sh1, dw_k, sh2, w3_k, sh3, wmask)

    return out_flat.reshape(B, Cout, H, W)


def _reference(x, params, eps=1e-5):
    """Pure-JAX NCHW reference matching the PyTorch forward (eval-mode BN)."""
    (w1, b1, g1, be1, m1, v1,
     wdw, g2, be2, m2, v2,
     w3, b3, g3, be3, m3, v3) = params
    Cmid = w1.shape[0]

    def bn(y, g, be, m, v):
        return (g[None, :, None, None] * (y - m[None, :, None, None]) /
                jnp.sqrt(v + eps)[None, :, None, None] + be[None, :, None, None])

    dn = ('NCHW', 'OIHW', 'NCHW')
    y = jax.lax.conv_general_dilated(x, w1, (1, 1), 'VALID',
                                     dimension_numbers=dn)
    y = y + b1[None, :, None, None]
    y = jnp.maximum(bn(y, g1, be1, m1, v1), 0.0)
    y = jax.lax.conv_general_dilated(y, wdw, (1, 1), ((1, 1), (1, 1)),
                                     dimension_numbers=dn,
                                     feature_group_count=Cmid)
    y = jnp.maximum(bn(y, g2, be2, m2, v2), 0.0)
    y = jax.lax.conv_general_dilated(y, w3, (1, 1), 'VALID',
                                     dimension_numbers=dn)
    y = y + b3[None, :, None, None]
    y = bn(y, g3, be3, m3, v3)
    return jnp.maximum(y + x, 0.0)


def _make_params(key, inplanes, planes):
    Cmid = planes  # planes * exp, exp == 1
    ks = jax.random.split(key, 12)
    w1 = 0.2 * jax.random.normal(ks[0], (Cmid, inplanes, 1, 1), jnp.float32)
    b1 = 0.1 * jax.random.normal(ks[1], (Cmid,), jnp.float32)
    g1 = 1.0 + 0.1 * jax.random.normal(ks[2], (Cmid,), jnp.float32)
    be1 = 0.05 * jax.random.normal(ks[3], (Cmid,), jnp.float32)
    m1 = 0.05 * jax.random.normal(ks[4], (Cmid,), jnp.float32)
    v1 = 0.5 + jax.random.uniform(ks[5], (Cmid,), jnp.float32)

    wdw = 0.2 * jax.random.normal(ks[6], (Cmid, 1, 3, 3), jnp.float32)
    g2 = 1.0 + 0.1 * jax.random.normal(ks[7], (Cmid,), jnp.float32)
    be2 = 0.05 * jax.random.normal(ks[8], (Cmid,), jnp.float32)
    m2 = 0.05 * jax.random.normal(ks[9], (Cmid,), jnp.float32)
    v2 = 0.5 + jax.random.uniform(ks[10], (Cmid,), jnp.float32)

    ks2 = jax.random.split(ks[11], 7)
    w3 = 0.2 * jax.random.normal(ks2[0], (planes, Cmid, 1, 1), jnp.float32)
    b3 = 0.1 * jax.random.normal(ks2[1], (planes,), jnp.float32)
    g3 = 1.0 + 0.1 * jax.random.normal(ks2[2], (planes,), jnp.float32)
    be3 = 0.05 * jax.random.normal(ks2[3], (planes,), jnp.float32)
    m3 = 0.05 * jax.random.normal(ks2[4], (planes,), jnp.float32)
    v3 = 0.5 + jax.random.uniform(ks2[5], (planes,), jnp.float32)

    return (w1, b1, g1, be1, m1, v1,
            wdw, g2, be2, m2, v2,
            w3, b3, g3, be3, m3, v3)


if __name__ == "__main__":
    B, C, H, W = 2, 8, 16, 16          # inplanes = planes = 8 (residual path)
    key = jax.random.PRNGKey(0)
    kx, kp = jax.random.split(key)
    x = jax.random.normal(kx, (B, C, H, W), jnp.float32)
    params = _make_params(kp, inplanes=C, planes=C)

    ref = jax.block_until_ready(_reference(x, params))

    # f32 path, auto-picked strip (whole image for this small map).
    out = jax.block_until_ready(inverse_bottleneck_dwck5(x, params))
    np.testing.assert_allclose(np.asarray(out), np.asarray(ref),
                               rtol=1e-4, atol=1e-4)

    # Multi-strip path (exercises halo handling across strip boundaries).
    out_s = jax.block_until_ready(
        inverse_bottleneck_dwck5(x, params, strip_rows=8))
    np.testing.assert_allclose(np.asarray(out_s), np.asarray(ref),
                               rtol=1e-4, atol=1e-4)

    # bf16 MXU fast path (v5e/v6e/v7x) — numerically looser by design.
    out_bf16 = jax.block_until_ready(
        inverse_bottleneck_dwck5(x, params, matmul_dtype=jnp.bfloat16))
    np.testing.assert_allclose(np.asarray(out_bf16), np.asarray(ref),
                               rtol=5e-2, atol=5e-2)

    print("KERNEL_OK")
</pallas_src>

<mosaic_0001>
module attributes {stable_mosaic.version = 11 : i64} {
  func.func @_ib_kernel(%arg0: i32, %arg1: i32, %arg2: memref<1x1x8x288xf32, #tpu.memory_space<vmem>>, %arg3: memref<8x8xf32, #tpu.memory_space<vmem>>, %arg4: memref<8x1xf32, #tpu.memory_space<vmem>>, %arg5: memref<8x9xf32, #tpu.memory_space<vmem>>, %arg6: memref<8x1xf32, #tpu.memory_space<vmem>>, %arg7: memref<8x8xf32, #tpu.memory_space<vmem>>, %arg8: memref<8x1xf32, #tpu.memory_space<vmem>>, %arg9: memref<2x256xf32, #tpu.memory_space<vmem>>, %arg10: memref<1x8x256xf32, #tpu.memory_space<vmem>>) attributes {dimension_semantics = [#tpu.dimension_semantics<parallel>, #tpu.dimension_semantics<parallel>], iteration_bounds = array<i64: 2, 1>, scalar_prefetch = 0 : i64, scratch_operands = 0 : i64, tpu.core_type = #tpu.core_type<tc>, window_params = [{transform_indices = @transform_0, window_bounds = array<i64: 1, 1, 8, 288>}, {pipeline_mode = #tpu.pipeline_mode<synchronous>, transform_indices = @transform_1, window_bounds = array<i64: 8, 8>}, {pipeline_mode = #tpu.pipeline_mode<synchronous>, transform_indices = @transform_2, window_bounds = array<i64: 8, 1>}, {pipeline_mode = #tpu.pipeline_mode<synchronous>, transform_indices = @transform_3, window_bounds = array<i64: 8, 9>}, {pipeline_mode = #tpu.pipeline_mode<synchronous>, transform_indices = @transform_4, window_bounds = array<i64: 8, 1>}, {pipeline_mode = #tpu.pipeline_mode<synchronous>, transform_indices = @transform_5, window_bounds = array<i64: 8, 8>}, {pipeline_mode = #tpu.pipeline_mode<synchronous>, transform_indices = @transform_6, window_bounds = array<i64: 8, 1>}, {pipeline_mode = #tpu.pipeline_mode<synchronous>, transform_indices = @transform_7, window_bounds = array<i64: 2, 256>}, {transform_indices = @transform_8, window_bounds = array<i64: 1, 8, 256>}]} {
    %c0 = arith.constant 0 : index
    %c0_0 = arith.constant 0 : index
    %c0_1 = arith.constant 0 : index
    %c0_2 = arith.constant 0 : index
    %0 = vector.load %arg2[%c0, %c0_0, %c0_1, %c0_2] : memref<1x1x8x288xf32, #tpu.memory_space<vmem>>, vector<1x1x8x288xf32>
    %1 = vector.shape_cast %0 : vector<1x1x8x288xf32> to vector<8x288xf32>
    %c0_3 = arith.constant 0 : index
    %c0_4 = arith.constant 0 : index
    %2 = vector.load %arg3[%c0_3, %c0_4] : memref<8x8xf32, #tpu.memory_space<vmem>>, vector<8x8xf32>
    %cst = arith.constant dense<0.000000e+00> : vector<8x288xf32>
    %3 = tpu.matmul %2, %1, %cst {dimension_numbers = #tpu.dot_dimension_numbers<[1], [0], [0], [1], [0, 0, 1, 1], [], []>} : vector<8x8xf32>, vector<8x288xf32>, vector<8x288xf32> -> vector<8x288xf32>
    %c0_5 = arith.constant 0 : index
    %c0_6 = arith.constant 0 : index
    %4 = vector.load %arg4[%c0_5, %c0_6] : memref<8x1xf32, #tpu.memory_space<vmem>>, vector<8x1xf32>
    %5 = vector.broadcast %4 : vector<8x1xf32> to vector<8x288xf32>
    %6 = arith.addf %3, %5 : vector<8x288xf32>
    %cst_7 = arith.constant 0.000000e+00 : f32
    %7 = vector.broadcast %cst_7 : f32 to vector<8x288xf32>
    %8 = arith.maximumf %6, %7 : vector<8x288xf32>
    %9 = tpu.iota {dimensions = array<i32: 1>} : vector<1x288xi32>
    %c0_i32 = arith.constant 0 : i32
    %10 = arith.cmpi sgt, %arg1, %c0_i32 : i32
    %c0_i32_8 = arith.constant 0 : i32
    %11 = arith.cmpi slt, %arg1, %c0_i32_8 : i32
    %c16_i32 = arith.constant 16 : i32
    %12 = vector.broadcast %c16_i32 : i32 to vector<1x288xi32>
    %13 = arith.cmpi sge, %9, %12 : vector<1x288xi32>
    %14 = vector.broadcast %10 : i1 to vector<1x288xi1>
    %15 = arith.ori %14, %13 : vector<1x288xi1>
    %c272_i32 = arith.constant 272 : i32
    %16 = vector.broadcast %c272_i32 : i32 to vector<1x288xi32>
    %17 = arith.cmpi slt, %9, %16 : vector<1x288xi32>
    %18 = vector.broadcast %11 : i1 to vector<1x288xi1>
    %19 = arith.ori %18, %17 : vector<1x288xi1>
    %20 = arith.andi %15, %19 : vector<1x288xi1>
    %cst_9 = arith.constant 0.000000e+00 : f32
    %21 = vector.shape_cast %20 : vector<1x288xi1> to vector<1x288xi1>
    %22 = vector.broadcast %21 : vector<1x288xi1> to vector<8x288xi1>
    %23 = vector.broadcast %cst_9 : f32 to vector<8x288xf32>
    %24 = arith.select %22, %8, %23 : vector<8x288xi1>, vector<8x288xf32>
    %c0_10 = arith.constant 0 : index
    %c0_11 = arith.constant 0 : index
    %25 = vector.load %arg5[%c0_10, %c0_11] : memref<8x9xf32, #tpu.memory_space<vmem>>, vector<8x9xf32>
    %cst_12 = arith.constant 0.000000e+00 : f32
    %26 = vector.broadcast %cst_12 : f32 to vector<8x1xf32>
    %27 = tpu.concatenate %26, %24, %26 in 1 : vector<8x1xf32>, vector<8x288xf32>, vector<8x1xf32> -> vector<8x290xf32>
    %28 = vector.extract_strided_slice %27 {offsets = [0, 0], sizes = [8, 256], strides = [1, 1]} : vector<8x290xf32> to vector<8x256xf32>
    %29 = vector.extract_strided_slice %25 {offsets = [0, 0], sizes = [8, 1], strides = [1, 1]} : vector<8x9xf32> to vector<8x1xf32>
    %30 = vector.broadcast %29 : vector<8x1xf32> to vector<8x256xf32>
    %31 = arith.mulf %28, %30 : vector<8x256xf32>
    %32 = vector.extract_strided_slice %27 {offsets = [0, 16], sizes = [8, 256], strides = [1, 1]} : vector<8x290xf32> to vector<8x256xf32>
    %33 = vector.extract_strided_slice %25 {offsets = [0, 3], sizes = [8, 1], strides = [1, 1]} : vector<8x9xf32> to vector<8x1xf32>
    %34 = vector.broadcast %33 : vector<8x1xf32> to vector<8x256xf32>
    %35 = arith.mulf %32, %34 : vector<8x256xf32>
    %36 = arith.addf %31, %35 : vector<8x256xf32>
    %37 = vector.extract_strided_slice %27 {offsets = [0, 32], sizes = [8, 256], strides = [1, 1]} : vector<8x290xf32> to vector<8x256xf32>
    %38 = vector.extract_strided_slice %25 {offsets = [0, 6], sizes = [8, 1], strides = [1, 1]} : vector<8x9xf32> to vector<8x1xf32>
    %39 = vector.broadcast %38 : vector<8x1xf32> to vector<8x256xf32>
    %40 = arith.mulf %37, %39 : vector<8x256xf32>
    %41 = arith.addf %36, %40 : vector<8x256xf32>
    %c0_13 = arith.constant 0 : index
    %c0_14 = arith.constant 0 : index
    %42 = vector.load %arg9[%c0_13, %c0_14] : memref<2x256xf32, #tpu.memory_space<vmem>>, vector<1x256xf32>
    %43 = vector.broadcast %42 : vector<1x256xf32> to vector<8x256xf32>
    %44 = arith.mulf %41, %43 : vector<8x256xf32>
    %45 = vector.extract_strided_slice %27 {offsets = [0, 1], sizes = [8, 256], strides = [1, 1]} : vector<8x290xf32> to vector<8x256xf32>
    %46 = vector.extract_strided_slice %25 {offsets = [0, 1], sizes = [8, 1], strides = [1, 1]} : vector<8x9xf32> to vector<8x1xf32>
    %47 = vector.broadcast %46 : vector<8x1xf32> to vector<8x256xf32>
    %48 = arith.mulf %45, %47 : vector<8x256xf32>
    %49 = vector.extract_strided_slice %27 {offsets = [0, 17], sizes = [8, 256], strides = [1, 1]} : vector<8x290xf32> to vector<8x256xf32>
    %50 = vector.extract_strided_slice %25 {offsets = [0, 4], sizes = [8, 1], strides = [1, 1]} : vector<8x9xf32> to vector<8x1xf32>
    %51 = vector.broadcast %50 : vector<8x1xf32> to vector<8x256xf32>
    %52 = arith.mulf %49, %51 : vector<8x256xf32>
    %53 = arith.addf %48, %52 : vector<8x256xf32>
    %54 = vector.extract_strided_slice %27 {offsets = [0, 33], sizes = [8, 256], strides = [1, 1]} : vector<8x290xf32> to vector<8x256xf32>
    %55 = vector.extract_strided_slice %25 {offsets = [0, 7], sizes = [8, 1], strides = [1, 1]} : vector<8x9xf32> to vector<8x1xf32>
    %56 = vector.broadcast %55 : vector<8x1xf32> to vector<8x256xf32>
    %57 = arith.mulf %54, %56 : vector<8x256xf32>
    %58 = arith.addf %53, %57 : vector<8x256xf32>
    %59 = arith.addf %44, %58 : vector<8x256xf32>
    %60 = vector.extract_strided_slice %27 {offsets = [0, 2], sizes = [8, 256], strides = [1, 1]} : vector<8x290xf32> to vector<8x256xf32>
    %61 = vector.extract_strided_slice %25 {offsets = [0, 2], sizes = [8, 1], strides = [1, 1]} : vector<8x9xf32> to vector<8x1xf32>
    %62 = vector.broadcast %61 : vector<8x1xf32> to vector<8x256xf32>
    %63 = arith.mulf %60, %62 : vector<8x256xf32>
    %64 = vector.extract_strided_slice %27 {offsets = [0, 18], sizes = [8, 256], strides = [1, 1]} : vector<8x290xf32> to vector<8x256xf32>
    %65 = vector.extract_strided_slice %25 {offsets = [0, 5], sizes = [8, 1], strides = [1, 1]} : vector<8x9xf32> to vector<8x1xf32>
    %66 = vector.broadcast %65 : vector<8x1xf32> to vector<8x256xf32>
    %67 = arith.mulf %64, %66 : vector<8x256xf32>
    %68 = arith.addf %63, %67 : vector<8x256xf32>
    %69 = vector.extract_strided_slice %27 {offsets = [0, 34], sizes = [8, 256], strides = [1, 1]} : vector<8x290xf32> to vector<8x256xf32>
    %70 = vector.extract_strided_slice %25 {offsets = [0, 8], sizes = [8, 1], strides = [1, 1]} : vector<8x9xf32> to vector<8x1xf32>
    %71 = vector.broadcast %70 : vector<8x1xf32> to vector<8x256xf32>
    %72 = arith.mulf %69, %71 : vector<8x256xf32>
    %73 = arith.addf %68, %72 : vector<8x256xf32>
    %c1 = arith.constant 1 : index
    %c0_15 = arith.constant 0 : index
    %74 = vector.load %arg9[%c1, %c0_15] : memref<2x256xf32, #tpu.memory_space<vmem>>, vector<1x256xf32>
    %75 = vector.broadcast %74 : vector<1x256xf32> to vector<8x256xf32>
    %76 = arith.mulf %73, %75 : vector<8x256xf32>
    %77 = arith.addf %59, %76 : vector<8x256xf32>
    %c0_16 = arith.constant 0 : index
    %c0_17 = arith.constant 0 : index
    %78 = vector.load %arg6[%c0_16, %c0_17] : memref<8x1xf32, #tpu.memory_space<vmem>>, vector<8x1xf32>
    %79 = vector.broadcast %78 : vector<8x1xf32> to vector<8x256xf32>
    %80 = arith.addf %77, %79 : vector<8x256xf32>
    %cst_18 = arith.constant 0.000000e+00 : f32
    %81 = vector.broadcast %cst_18 : f32 to vector<8x256xf32>
    %82 = arith.maximumf %80, %81 : vector<8x256xf32>
    %c0_19 = arith.constant 0 : index
    %c0_20 = arith.constant 0 : index
    %83 = vector.load %arg7[%c0_19, %c0_20] : memref<8x8xf32, #tpu.memory_space<vmem>>, vector<8x8xf32>
    %cst_21 = arith.constant dense<0.000000e+00> : vector<8x256xf32>
    %84 = tpu.matmul %83, %82, %cst_21 {dimension_numbers = #tpu.dot_dimension_numbers<[1], [0], [0], [1], [0, 0, 1, 1], [], []>} : vector<8x8xf32>, vector<8x256xf32>, vector<8x256xf32> -> vector<8x256xf32>
    %c0_22 = arith.constant 0 : index
    %c0_23 = arith.constant 0 : index
    %85 = vector.load %arg8[%c0_22, %c0_23] : memref<8x1xf32, #tpu.memory_space<vmem>>, vector<8x1xf32>
    %86 = vector.broadcast %85 : vector<8x1xf32> to vector<8x256xf32>
    %87 = arith.addf %84, %86 : vector<8x256xf32>
    %c0_24 = arith.constant 0 : index
    %c0_25 = arith.constant 0 : index
    %c0_26 = arith.constant 0 : index
    %c16 = arith.constant 16 : index
    %88 = vector.load %arg2[%c0_24, %c0_25, %c0_26, %c16] : memref<1x1x8x288xf32, #tpu.memory_space<vmem>>, vector<1x1x8x256xf32>
    %89 = vector.shape_cast %88 : vector<1x1x8x256xf32> to vector<8x256xf32>
    %90 = arith.addf %87, %89 : vector<8x256xf32>
    %cst_27 = arith.constant 0.000000e+00 : f32
    %91 = vector.broadcast %cst_27 : f32 to vector<8x256xf32>
    %92 = arith.maximumf %90, %91 : vector<8x256xf32>
    %c0_28 = arith.constant 0 : index
    %c0_29 = arith.constant 0 : index
    %c0_30 = arith.constant 0 : index
    %93 = vector.load %arg10[%c0_28, %c0_29, %c0_30] : memref<1x8x256xf32, #tpu.memory_space<vmem>>, vector<1x8x256xf32>
    %94 = vector.shape_cast %93 : vector<1x8x256xf32> to vector<8x256xf32>
    %95 = vector.shape_cast %92 : vector<8x256xf32> to vector<1x8x256xf32>
    tpu.vector_store %arg10[%c0_28, %c0_29, %c0_30], %95 {strides = array<i32>} : memref<1x8x256xf32, #tpu.memory_space<vmem>>, vector<1x8x256xf32>,
    return
  }
  func.func @transform_0(%arg0: i32, %arg1: i32) -> (i32, i32, i32, i32) {
    %c0_i32 = arith.constant 0 : i32
    %c0_i32_0 = arith.constant 0 : i32
    %c0_i32_1 = arith.constant 0 : i32
    return %arg0, %arg1, %c0_i32, %c0_i32_0 : i32, i32, i32, i32
  }
  func.func @transform_1(%arg0: i32, %arg1: i32) -> (i32, i32) {
    %c0_i32 = arith.constant 0 : i32
    %c0_i32_0 = arith.constant 0 : i32
    %c0_i32_1 = arith.constant 0 : i32
    return %c0_i32, %c0_i32_0 : i32, i32
  }
  func.func @transform_2(%arg0: i32, %arg1: i32) -> (i32, i32) {
    %c0_i32 = arith.constant 0 : i32
    %c0_i32_0 = arith.constant 0 : i32
    %c0_i32_1 = arith.constant 0 : i32
    return %c0_i32, %c0_i32_0 : i32, i32
  }
  func.func @transform_3(%arg0: i32, %arg1: i32) -> (i32, i32) {
    %c0_i32 = arith.constant 0 : i32
    %c0_i32_0 = arith.constant 0 : i32
    %c0_i32_1 = arith.constant 0 : i32
    return %c0_i32, %c0_i32_0 : i32, i32
  }
  func.func @transform_4(%arg0: i32, %arg1: i32) -> (i32, i32) {
    %c0_i32 = arith.constant 0 : i32
    %c0_i32_0 = arith.constant 0 : i32
    %c0_i32_1 = arith.constant 0 : i32
    return %c0_i32, %c0_i32_0 : i32, i32
  }
  func.func @transform_5(%arg0: i32, %arg1: i32) -> (i32, i32) {
    %c0_i32 = arith.constant 0 : i32
    %c0_i32_0 = arith.constant 0 : i32
    %c0_i32_1 = arith.constant 0 : i32
    return %c0_i32, %c0_i32_0 : i32, i32
  }
  func.func @transform_6(%arg0: i32, %arg1: i32) -> (i32, i32) {
    %c0_i32 = arith.constant 0 : i32
    %c0_i32_0 = arith.constant 0 : i32
    %c0_i32_1 = arith.constant 0 : i32
    return %c0_i32, %c0_i32_0 : i32, i32
  }
  func.func @transform_7(%arg0: i32, %arg1: i32) -> (i32, i32) {
    %c0_i32 = arith.constant 0 : i32
    %c0_i32_0 = arith.constant 0 : i32
    %c0_i32_1 = arith.constant 0 : i32
    return %c0_i32, %c0_i32_0 : i32, i32
  }
  func.func @transform_8(%arg0: i32, %arg1: i32) -> (i32, i32, i32) {
    %c0_i32 = arith.constant 0 : i32
    %c0_i32_0 = arith.constant 0 : i32
    return %arg0, %c0_i32, %arg1 : i32, i32, i32
  }
}

</mosaic_0001>

<bundles_post_ra>
// kernel: tpu_custom_call.1
= control target key start
LH: loop header
LB: loop body
LE: loop exit
PB: predicated region body
PF: predicated region fallthrough
CT: control target
= control target key end

     0   :  { %13 = vsyncpa [#allocation3], 0  ;;  %s1595_s0 = inlined_call_operand.hbm [shape: f32[2,1,8,288], index: 0, kind: input, shape index: {}]   ;;  %s1596_s1 = inlined_call_operand.vmem [shape: f32[8,8], index: 1, kind: input, shape index: {}]   ;;  %s1597_s2 = inlined_call_operand.vmem [shape: f32[8,1], index: 2, kind: input, shape index: {}]   ;;  %s1598_s3 = inlined_call_operand.vmem [shape: f32[8,9], index: 3, kind: input, shape index: {}]   ;;  %s1599_s4 = inlined_call_operand.vmem [shape: f32[8,1], index: 4, kind: input, shape index: {}]   ;;  %s1600_s5 = inlined_call_operand.vmem [shape: f32[8,8], index: 5, kind: input, shape index: {}]   ;;  %s1601_s6 = inlined_call_operand.vmem [shape: f32[8,1], index: 6, kind: input, shape index: {}]   ;;  %s1602_s7 = inlined_call_operand.vmem [shape: f32[2,256], index: 7, kind: input, shape index: {}]   ;;  %s1603_s8 = inlined_call_operand.hbm [shape: f32[2,8,256], index: 8, kind: output, shape index: {}]  }
   0x1   :  { %15 = vsyncpa [#allocation3 + $0x1], 0 }
   0x2   :  { %16 = vsyncpa [#allocation4], 0 }
   0x3   :  { %18 = vsyncpa [#allocation4 + $0x1], 0  ;;  %s1292_s27 = smov 0   ;;  %s1294_s28 = smov 0  }
   0x4   :  { %s1296_s29 = smov 0   ;;  %s1298_s30 = smov 0  }
   0x5   :  { %s1300_s9 = smov 0   ;;  %s1302_s10 = smov 0  }
   0x6 LB: > { %1607 = sst [smem:[#allocation8_spill]] %s1222_s9  ;;  %s997_s11 = sadd.s32 4294967295, %s1226_s10   ;;  %s1226_s10 = sphi %s1302_s10, %s24_s10   ;;  %s1222_s9 = sphi %s1300_s9, %s1619_s9   ;;  %s1218_s30 = sphi %s1298_s30, %s1618_s30   ;;  %s1214_s29 = sphi %s1296_s29, %s1622_s29   ;;  %s1210_s28 = sphi %s1294_s28, %s1621_s28   ;;  %s1206_s27 = sphi %s1292_s27, %s1620_s27  }
   0x7   : > { %s998_s12 = sadd.s32 4294967294, %s1226_s10   ;;  %s36_s13 = sadd.s32 1, %s1222_s9 }
   0x8   : > { %s45_s14 = sadd.s32 1, %s1214_s29  ;;  %p38_p0 = scmp.ge.s32.totalorder %s36_s13, 2 }
   0x9   : > { %p52_p1 = scmp.ne.s32.totalorder %s1214_s29, %s1210_s28  ;;  %p53_p2 = scmp.eq.s32.totalorder %s1226_s10, 0 }
   0xa   : > { %p58_p3 = scmp.ne.s32.totalorder %s1210_s28, %s1206_s27  ;;  %s1624_s13 = smov (%p38_p0, %s36_s13), 0 }
   0xb   : > { %1608 = sst [smem:[#allocation9_spill]] %s1624_s13  ;;  %p1333_p4 = por %p53_p2, %p52_p1 }
   0xc   : > { %p59_p5 = scmp.eq.s32.totalorder %s997_s11, 0  ;;  %s40_s16 = ssub.s32 %s1222_s9, %s1624_s13 }
   0xd   : > { %p231_p6 = scmp.eq.s32.totalorder %s997_s11, 1  ;;  %p43_p7 = scmp.eq.s32.totalorder %s40_s16, 0 }
   0xe   : > { %p1339_p8 = por %p59_p5, %p58_p3  ;;  %p237_p10 = scmp.eq.s32.totalorder %s998_s12, 1 }
   0xf   : > { %p1343_p9 = por %p231_p6, %p52_p1  ;;  %p1036_p13 = scmp.lt.s32.totalorder %s1226_s10, 2 }
  0x10   : > { %s1348_s19 = scalar_select %p43_p7, %s1214_s29, %s45_s14  }
  0x11   : > { %s1611_s18 = scalar_select %p1343_p9, 1, 0 }
  0x12   : > { %p1350_p11 = por %p237_p10, %p58_p3  ;;  %s278_s21 = sand.u32 1, %s1214_s29  }
  0x13   : > { %s1021_s22 = smul.u32 24, %s278_s21  ;;  %p1360_p0 = pnand %p1036_p13, %p1333_p4 }
  0x14   : > { %s1612_s20 = scalar_select %p1350_p11, 1, 0 }
  0x15   : > { %s1022_s23 = smul.u32 384, %s1222_s9  ;;  %s282_s12 = scalar_lea.vmem [#allocation2], %s1021_s22 }
  0x16   : > { %s292_s14 = sshll.u32 %s282_s12, 4  ;;  %s279_s15 = scalar_lea.sflag [#allocation3], %s278_s21  ;;  %s1370_s14 = int_to_ptr.vmem [resolvable:$true] %s292_s14 }
  0x17   : > { %s1368_s11 = scalar_lea.hbm %s1595_s0, %s1022_s23  ;;  %p1116_p3 = pneg %p1360_p0 }
  0x18   : > { %s1114_s16 = scalar_lea.hbm %s1368_s11, 384  ;;  %s1119_s26 = scalar_lea.hbm %s1595_s0, 768 }
  0x19   : > { %p1115_p2 = scmp.ne.s32.totalorder %s1368_s11, %s1114_s16  ;;  %p1120_p6 = scmp.lt.u32.totalorder %s1368_s11, %s1595_s0 }
  0x1a   : > { %p1121_p7 = scmp.lt.u32.totalorder %s1119_s26, %s1114_s16  ;;  %p1123_p13 = scmp.lt.u32.totalorder %s1114_s16, %s1368_s11 }
  0x1b   : > { %p1117_p4 = pnand %p1116_p3, %p1115_p2 }
  0x1c   : > { %p1122_p10 = por %p1121_p7, %p1120_p6 }
  0x1d   : > { %p1118_p5 = pneg %p1117_p4 }
  0x1e   : > { %p1124_p12 = por %p1123_p13, %p1122_p10 }
  0x20   : > { %p1125_p1 = pnand %p1124_p12, %p1118_p5 }
  0x22   : > { %1128 = shalt.err (!%p1125_p1)
}
  0x23   : > { %s1129_s21 = scalar_lea.vmem %s1370_s14, 384  ;;  %s1228_s22 = smov [#allocation2]  }
  0x24   : > { %p1130_p2 = scmp.ne.s32.totalorder %s1370_s14, %s1129_s21  ;;  %s1134_s12 = sshll.u32 %s1228_s22, 4  ;;  %s1135_s12 = int_to_ptr.vmem [resolvable:$false] %s1134_s12 }
  0x25   : > { %s1136_s9 = scalar_lea.vmem %s1135_s12, 768  ;;  %p1137_p9 = scmp.lt.s32.totalorder %s1370_s14, %s1135_s12 }
  0x26   : > { %p1132_p4 = pnand %p1130_p2, %p1116_p3  ;;  %p1138_p6 = scmp.lt.s32.totalorder %s1136_s9, %s1129_s21 }
  0x28   : > { %p1133_p11 = pneg %p1132_p4  ;;  %p1139_p7 = por %p1138_p6, %p1137_p9 }
  0x2a   : > { %p1140_p10 = pnand %p1139_p7, %p1133_p11 }
  0x2c   : > { %1143 = shalt.err (!%p1140_p10)
}
  0x2d   : > { %1031 = dma.hbm_to_vmem [thread:$0]  (!%p1360_p0), %s1368_s11, 384, %s1370_s14, %s279_s15  }
  0x2e   : > { %p297_p12 = scmp.lt.s32.totalorder %s1226_s10, 3  ;;  %p1614_p1 = scmp.ge.s32.totalorder %s1226_s10, 1 }
  0x30   : > { %p298_p3 = pnand %p1614_p1, %p297_p12 }
  0x31   : > { %s1401_s13 = sand.u32 (!%p298_p3), 1, %s1210_s28  }
  0x32   : > { %301 = sbr.rel (%p298_p3) target bundleno = 905 (0x389), region = 52  ;;  %s304_s25 = scalar_lea.sflag (!%p298_p3), [#allocation3], %s1401_s13 }
  0x33   : > { %s1023_s16 = smul.u32 (!%p298_p3), 24, %s1401_s13 }
  0x35   : > { %s307_s23 = scalar_lea.vmem (!%p298_p3), [#allocation2], %s1023_s16 }
  0x39   : > { %1197 = dma.done.wait (%p1339_p8), %s304_s25, 384  }
  0x3a   : > { %1199 = vsyncadd (%p1339_p8), %s304_s25, 4294966912  ;;  %v1229_v0 = vmov 0.0   ;;  %vm1230_vm0 = vmmov 0   ;;  %v1231_v1 = vmov 0   ;;  %v1232_v2 = vmov 5   ;;  %v1409_v3 = vld [vmem:[%s307_s23 + $0x8] sm:$0xff] }
  0x3b   : > { %1016 = vmatprep.subr.mxu1 %v1229_v0  ;;  %1018 = vmatprep.mubr.msk.f32.mxu1 %vm1230_vm0, %v1229_v0  ;;  %vm351_vm1 = vcmask 64512   ;;  %v1411_v4 = vld [vmem:[%s307_s23 + $0x10] sm:$0xff]  ;;  %v1413_v5 = vld [vmem:[%s307_s23] sm:$0xff]  ;;  %v1233_v9 = vmov 4   ;;  %v1234_v10 = vmov 7   ;;  %v1235_v11 = vmov 8  }
  0x3c   : > { %419 = vmatprep.mubr.f32.mxu0 %v1229_v0  ;;  %1103 = vset.pattern.permute.xlu0 %v1231_v1  ;;  %v344_v6 = vld [vmem:[%s1596_s1] sm:$0xff]  ;;  %v1236_v12 = vmov 3   ;;  %v1237_v13 = vmov 6   ;;  %v499_v14 = vlaneseq  ;;  %s1238_s21 = smov 1   ;;  %v1239_v30 = vmov 1   ;;  %s1241_s22 = smov 112  }
  0x3d   : > { %1105 = vset.pattern.permute.xlu1 %v1232_v2  ;;  %355 = vmatprep.subr.mxu0 %v1409_v3  ;;  %v345_v7 = vld [vmem:[%s1597_s2] sm:$0xff]  ;;  %v1240_v31 = vmov 2   ;;  %vm545_vm4 = vcmask 7168   ;;  %vm552_vm5 = vcmask 269312   ;;  %s1242_s12 = smov 96   ;;  %s1243_s25 = smov 2  }
  0x3e   : > { %1017 = vmatpush3.msra.mxu1 %v1411_v4  ;;  %v1426_v8 = vld [vmem:[%s1598_s3] sm:$0xff]  ;;  %356 = vmatpush1.msra.mxu0 %v1413_v5  ;;  %v500_v15 = vand.u32 127, %v499_v14  ;;  %v1461_v51 = vshrl.u32 %v499_v14, 7  ;;  %vm577_vm6 = vcmask 916480   ;;  %s1244_s24 = smov 127   ;;  %vm600_vm7 = vcmask 785408  }
  0x3f   : > { %1019 = vmatmul.mubr.msk.f32.vlgmr.msra.gmra.mrb[0].mxu1 %vm351_vm1, %v344_v6  ;;  %1004 = vmatmul.mubr.msk.f32.vlgmr.msra.gmra.mrb[0].mxu0 %vm351_vm1, %v344_v6  ;;  %v1006_v56 = vld [vmem:[%s1602_s7 + $0x1] ss:$2 sm:$0x3]  ;;  %vm762_vm8 = vcmask 15360   ;;  %s1245_s11 = smov 126   ;;  %vm685_vm9 = vcmask 1039360  }
  0x40   : > { %348 = vperm.xlu0 %1103, %v345_v7   ;;  %700 = vperm.xlu1 %1105, %v1426_v8   ;;  %v502_v17 = vadd.s32 256, %v500_v15  ;;  %vm505_vm3 = vcmp.ge.s32.totalorder %v500_v15, 16  ;;  %v615_v54 = vsub.s32 1, %v1461_v51  ;;  %v611_v55 = vsub.s32 0, %v1461_v51  ;;  %v786_v2 = vld [vmem:[%s1599_s4] sm:$0xff]  ;;  %s1003_s9 = sshll.u32 %s1401_s13, 4 }
  0x41   : > { %870 = vmatprep.mubr.f32.mxu0 %v1229_v0  ;;  %vm779_vm10 = vcmask 1031168   ;;  %s1013_s16 = sshll.u32 %s1218_s30, 8  ;;  %s897_s14 = scalar_lea.sflag [#allocation4], %s1401_s13 }
  0x42   : > { %vm516_vm2 = vcmp.lt.s32.totalorder %v502_v17, 272  ;;  %v757_v59 = vrot.slane %v1006_v56, %v615_v54  ;;  %v753_v60 = vrot.slane %v1006_v56, %v611_v55  ;;  %p1615_p9 = scmp.ne.s32.totalorder %s1611_s18, 0  ;;  %s1246_s30 = smov [#allocation5]  }
  0x43   : > { %s1148_s26 = sshll.u32 %s1246_s30, 4  ;;  %s1149_s26 = int_to_ptr.vmem [resolvable:$false] %s1148_s26 }
  0x44   : > { %1104 = vset.pattern.permute.xlu0 %v1233_v9  ;;  %1106 = vset.pattern.permute.xlu1 %v1234_v10 }
  0x45   : > { %629 = vperm.xlu0 %1104, %v1426_v8   ;;  %653 = vperm.xlu1 %1106, %v1426_v8  }
  0x49   : > { %1107 = vset.pattern.permute.xlu1 %v1235_v11  ;;  %1109 = vset.pattern.permute.xlu0 %v1237_v13 }
  0x4a   : > { %724 = vperm.xlu1 %1107, %v1426_v8  }
  0x4e   : > { %1108 = vset.pattern.permute.xlu1 %v1236_v12 }
  0xbf   : > { %v349_v16 = vpop.permute.xlu0 %348  ;;  %v701_v32 = vpop.permute.xlu1 %700 }
  0xc4   : > { %v654_v33 = vpop.permute.xlu1 %653  ;;  %v630_v34 = vpop.permute.xlu0 %629 }
  0xc9   : > { %v725_v35 = vpop.permute.xlu1 %724 }
 0x112   : > { %v492_v18 = vpop.f32.mrb[0].mxu1  ;;  %v421_v20 = vpop.f32.mrb[0].mxu0 }
 0x113   : > { %v493_v19 = vadd.f32 %v492_v18, %v349_v16  ;;  %v1020_v21 = vpop.f32.mrb[1].mxu1  ;;  %v422_v22 = vadd.f32 %v421_v20, %v349_v16  ;;  %v423_v23 = vpop.f32.mrb[1].mxu0 }
 0x114   : > { %v424_v25 = vadd.f32 %v423_v23, %v349_v16 }
 0x115   : > { %v498_v24 = vmax.f32 %v493_v19, 0.0  ;;  %v496_v28 = vmax.f32 %v422_v22, 0.0 }
 0x116   : > { %v497_v26 = vmax.f32 %v424_v25, 0.0 }
 0x117   : > { %v534_v27 = vsel %vm516_vm2, %v498_v24, 0.0  ;;  %v532_v29 = vsel %vm505_vm3, %v496_v28, 0.0 }
 0x118   : > { %543 = vrot.lane.b32.xlu1 %v534_v27, %s1238_s21  ;;  %541 = vrot.lane.b32.xlu0 %v497_v26, %s1238_s21 }
 0x11c   : > { %562 = vperm.xlu1 %1108, %v1426_v8   ;;  %539 = vrot.lane.b32.xlu0 %v532_v29, %s1238_s21  ;;  %s1150_s21 = scalar_lea.vmem %s1149_s26, 512 }
 0x120   : > { %1110 = vset.pattern.permute.xlu1 %v1239_v30  ;;  %585 = vperm.xlu0 %1109, %v1426_v8  }
 0x121   : > { %622 = vperm.xlu1 %1110, %v1426_v8  }
 0x124   : > { %1112 = vset.pattern.permute.xlu0 %v1231_v1 }
 0x125   : > { %1111 = vset.pattern.permute.xlu1 %v1240_v31 }
 0x126   : > { %693 = vperm.xlu1 %1111, %v1426_v8  }
 0x12a   : > { %1113 = vset.pattern.permute.xlu1 %v1231_v1 }
 0x18a   : > { %v542_v36 = vpop.permute.xlu0 %541  ;;  %v544_v38 = vpop.permute.xlu1 %543 }
 0x18b   : > { %v547_v43 = vsel %vm545_vm4, %v542_v36, %v544_v38 }
 0x18c   : > { %v1449_v46 = vsel %vm552_vm5, %v547_v43, 0.0 }
 0x18d   : > { %v634_v47 = vmul.f32 %v630_v34, %v1449_v46  ;;  %v705_v49 = vmul.f32 %v701_v32, %v1449_v46  ;;  %v658_v52 = vmul.f32 %v654_v33, %v1449_v46  ;;  %v729_v57 = vmul.f32 %v725_v35, %v1449_v46 }
 0x18e   : > { %v540_v37 = vpop.permute.xlu0 %539 }
 0x18f   : > { %v1439_v39 = vsel %vm545_vm4, %v540_v37, %v542_v36  ;;  %v1441_v40 = vsel %vm545_vm4, 0.0, %v540_v37 }
 0x190   : > { %v703_v41 = vmul.f32 %v701_v32, %v1441_v40  ;;  %v633_v42 = vmul.f32 %v630_v34, %v1439_v39  ;;  %v727_v44 = vmul.f32 %v725_v35, %v1441_v40  ;;  %v704_v45 = vmul.f32 %v701_v32, %v1439_v39 }
 0x191   : > { %v632_v48 = vmul.f32 %v630_v34, %v1441_v40  ;;  %v657_v50 = vmul.f32 %v654_v33, %v1439_v39  ;;  %v728_v53 = vmul.f32 %v725_v35, %v1439_v39  ;;  %v656_v58 = vmul.f32 %v654_v33, %v1441_v40 }
 0x192   : > { %709 = vrot.lane.b32.xlu1 %v703_v41, %s1241_s22  ;;  %640 = vrot.lane.b32.xlu0 %v633_v42, %s1241_s22 }
 0x196   : > { %733 = vrot.lane.b32.xlu1 %v727_v44, %s1242_s12  ;;  %711 = vrot.lane.b32.xlu0 %v704_v45, %s1241_s22 }
 0x19a   : > { %642 = vrot.lane.b32.xlu1 %v634_v47, %s1241_s22  ;;  %638 = vrot.lane.b32.xlu0 %v632_v48, %s1241_s22 }
 0x19b   : > { %v563_v61 = vpop.permute.xlu1 %562 }
 0x19c   : > { %v566_v62 = vmul.f32 %v563_v61, %v1439_v39  ;;  %v565_v0 = vmul.f32 %v563_v61, %v1441_v40  ;;  %v567_v7 = vmul.f32 %v563_v61, %v1449_v46 }
 0x19e   : > { %713 = vrot.lane.b32.xlu1 %v705_v49, %s1241_s22  ;;  %664 = vrot.lane.b32.xlu0 %v657_v50, %s1242_s12 }
 0x19f   : > { %v586_v63 = vpop.permute.xlu0 %585 }
 0x1a0   : > { %v589_v1 = vmul.f32 %v586_v63, %v1439_v39  ;;  %v588_v6 = vmul.f32 %v586_v63, %v1441_v40  ;;  %v623_v9 = vpop.permute.xlu1 %622 }
 0x1a1   : > { %v627_v19 = vmul.f32 %v623_v9, %v1449_v46  ;;  %v625_v25 = vmul.f32 %v623_v9, %v1441_v40  ;;  %v626_v34 = vmul.f32 %v623_v9, %v1439_v39 }
 0x1a2   : > { %666 = vrot.lane.b32.xlu1 %v658_v52, %s1242_s12  ;;  %735 = vrot.lane.b32.xlu0 %v728_v53, %s1242_s12 }
 0x1a5   : > { %v694_v10 = vpop.permute.xlu1 %693 }
 0x1a6   : > { %737 = vrot.lane.b32.xlu1 %v729_v57, %s1242_s12  ;;  %662 = vrot.lane.b32.xlu0 %v656_v58, %s1242_s12  ;;  %v697_v27 = vmul.f32 %v694_v10, %v1439_v39  ;;  %v696_v41 = vmul.f32 %v694_v10, %v1441_v40  ;;  %v698_v42 = vmul.f32 %v694_v10, %v1449_v46 }
 0x1aa   : > { %760 = vrot.lane.b32.xlu1 %v757_v59, %s1243_s25  ;;  %758 = vrot.lane.b32.xlu0 %v753_v60, %s1243_s25  ;;  %v797_v60 = vld [vmem:[%s1601_s6] sm:$0xff]  ;;  %s339_s25 = scalar_lea.vmem [#allocation5], %s1003_s9 }
 0x1ab   : > { %s913_s23 = sshll.u32 %s339_s25, 4  ;;  %s1548_s23 = int_to_ptr.vmem [resolvable:$true] %s913_s23 }
 0x1ac   : > { %s1144_s15 = scalar_lea.vmem %s1548_s23, 256  ;;  %p1151_p5 = scmp.lt.s32.totalorder %s1548_s23, %s1149_s26 }
 0x1ad   : > { %p1145_p8 = scmp.ne.s32.totalorder %s1548_s23, %s1144_s15  ;;  %p1152_p13 = scmp.lt.s32.totalorder %s1150_s21, %s1144_s15 }
 0x1ae   : > { %556 = vperm.xlu0 %1112, %v1426_v8   ;;  %573 = vrot.lane.b32.xlu1 %v566_v62, %s1241_s22  ;;  %v590_v8 = vmul.f32 %v586_v63, %v1449_v46 }
 0x1af   : > { %p1146_p11 = pnand %p1145_p8, %p1615_p9  ;;  %p1153_p2 = por %p1152_p13, %p1151_p5 }
 0x1b1   : > { %p1147_p0 = pneg %p1146_p11 }
 0x1b2   : > { %571 = vrot.lane.b32.xlu0 %v565_v0, %s1241_s22  ;;  %596 = vrot.lane.b32.xlu1 %v589_v1, %s1242_s12 }
 0x1b3   : > { %p1154_p4 = pnand %p1153_p2, %p1147_p0 }
 0x1b6   : > { %789 = vperm.xlu0 %1112, %v786_v2   ;;  %594 = vrot.lane.b32.xlu1 %v588_v6, %s1242_s12 }
 0x1ba   : > { %598 = vrot.lane.b32.xlu0 %v590_v8, %s1242_s12  ;;  %575 = vrot.lane.b32.xlu1 %v567_v7, %s1241_s22 }
 0x204   : > { %v710_v11 = vpop.permute.xlu1 %709  ;;  %v641_v12 = vpop.permute.xlu0 %640 }
 0x208   : > { %v734_v13 = vpop.permute.xlu1 %733  ;;  %v712_v14 = vpop.permute.xlu0 %711 }
 0x209   : > { %v715_v37 = vsel %vm577_vm6, %v710_v11, %v712_v14 }
 0x20a   : > { %v720_v50 = vadd.f32 %v715_v37, %v696_v41 }
 0x20c   : > { %v643_v15 = vpop.permute.xlu1 %642  ;;  %v639_v16 = vpop.permute.xlu0 %638 }
 0x20d   : > { %v651_v20 = vadd.f32 %v643_v15, %v627_v19  ;;  %v644_v23 = vsel %vm577_vm6, %v639_v16, %v641_v12  ;;  %v645_v31 = vsel %vm577_vm6, %v641_v12, %v643_v15 }
 0x20e   : > { %v649_v28 = vadd.f32 %v644_v23, %v625_v25  ;;  %v650_v43 = vadd.f32 %v645_v31, %v626_v34 }
 0x210   : > { %v714_v17 = vpop.permute.xlu1 %713  ;;  %v665_v18 = vpop.permute.xlu0 %664 }
 0x211   : > { %v716_v26 = vsel %vm577_vm6, %v712_v14, %v714_v17  ;;  %v722_v52 = vadd.f32 %v714_v17, %v698_v42 }
 0x212   : > { %v721_v35 = vadd.f32 %v716_v26, %v697_v27 }
 0x214   : > { %v667_v21 = vpop.permute.xlu1 %666  ;;  %v736_v22 = vpop.permute.xlu0 %735 }
 0x215   : > { %v675_v24 = vadd.f32 %v667_v21, %v651_v20  ;;  %v669_v38 = vsel %vm600_vm7, %v665_v18, %v667_v21  ;;  %v739_v48 = vsel %vm600_vm7, %v734_v13, %v736_v22 }
 0x216   : > { %v674_v53 = vadd.f32 %v669_v38, %v650_v43  ;;  %v744_v57 = vadd.f32 %v739_v48, %v720_v50 }
 0x217   : > { %683 = vrot.lane.b32.xlu0 %v675_v24, %s1244_s24 }
 0x218   : > { %v738_v29 = vpop.permute.xlu1 %737  ;;  %v663_v30 = vpop.permute.xlu0 %662 }
 0x219   : > { %v740_v32 = vsel %vm600_vm7, %v736_v22, %v738_v29  ;;  %v668_v33 = vsel %vm600_vm7, %v663_v30, %v665_v18  ;;  %v746_v58 = vadd.f32 %v738_v29, %v722_v52 }
 0x21a   : > { %v673_v36 = vadd.f32 %v668_v33, %v649_v28  ;;  %v745_v44 = vadd.f32 %v740_v32, %v721_v35  ;;  %v796_v33 = vld [vmem:[%s1600_s5] sm:$0xff] }
 0x21c   : > { %v761_v45 = vpop.permute.xlu1 %760  ;;  %679 = vrot.lane.b32.xlu1 %v673_v36, %s1244_s24  ;;  %v759_v47 = vpop.permute.xlu0 %758 }
 0x21d   : > { %v763_v49 = vsel %vm762_vm8, %v759_v47, %v761_v45  ;;  %v769_v46 = vmul.f32 %v761_v45, %v746_v58  ;;  %v767_v59 = vmul.f32 %v759_v47, %v744_v57 }
 0x21e   : > { %v768_v56 = vmul.f32 %v763_v49, %v745_v44 }
 0x220   : > { %681 = vrot.lane.b32.xlu1 %v674_v53, %s1244_s24  ;;  %775 = vrot.lane.b32.xlu0 %v768_v56, %s1245_s11  ;;  %v574_v61 = vpop.permute.xlu1 %573 }
 0x224   : > { %777 = vrot.lane.b32.xlu1 %v769_v46, %s1245_s11  ;;  %773 = vrot.lane.b32.xlu0 %v767_v59, %s1245_s11  ;;  %v597_v63 = vpop.permute.xlu1 %596  ;;  %s1546_s11 = scalar_lea.hbm %s1603_s8, %s1013_s16 }
 0x228   : > { %800 = vperm.xlu1 %1113, %v797_v60   ;;  %880 = vrot.lane.b32.xlu0 %v1413_v5, %s1241_s22  ;;  %v595_v1 = vpop.permute.xlu1 %594 }
 0x229   : > { %v601_v15 = vsel %vm600_vm7, %v595_v1, %v597_v63 }
 0x22c   : > { %882 = vrot.lane.b32.xlu1 %v1409_v3, %s1241_s22  ;;  %884 = vrot.lane.b32.xlu0 %v1411_v4, %s1241_s22  ;;  %v576_v7 = vpop.permute.xlu1 %575  ;;  %v607_v3 = vld [vmem:[%s1602_s7] ss:$2 sm:$0x3] }
 0x22d   : > { %v557_v62 = vpop.permute.xlu0 %556  ;;  %v579_v4 = vsel %vm577_vm6, %v574_v61, %v576_v7  ;;  %v616_v17 = vrot.slane %v607_v3, %v615_v54 }
 0x22e   : > { %v559_v8 = vmul.f32 %v557_v62, %v1441_v40  ;;  %v560_v9 = vmul.f32 %v557_v62, %v1439_v39  ;;  %v612_v40 = vrot.slane %v607_v3, %v611_v55 }
 0x230   : > { %v583_v12 = vadd.f32 %v579_v4, %v560_v9 }
 0x231   : > { %v572_v0 = vpop.permute.xlu0 %571 }
 0x232   : > { %v578_v6 = vsel %vm577_vm6, %v572_v0, %v574_v61 }
 0x233   : > { %v582_v10 = vadd.f32 %v578_v6, %v559_v8 }
 0x235   : > { %v790_v2 = vpop.permute.xlu0 %789  ;;  %v605_v16 = vadd.f32 %v601_v15, %v582_v10 }
 0x237   : > { %v619_v22 = vmul.f32 %v612_v40, %v605_v16 }
 0x239   : > { %v599_v5 = vpop.permute.xlu0 %598 }
 0x23a   : > { %v602_v11 = vsel %vm600_vm7, %v597_v63, %v599_v5 }
 0x23b   : > { %v606_v39 = vadd.f32 %v602_v11, %v583_v12 }
 0x23d   : > { %v620_v23 = vmul.f32 %v616_v17, %v606_v39 }
 0x289   : > { %v684_v13 = vpop.permute.xlu0 %683 }
 0x28e   : > { %v680_v14 = vpop.permute.xlu1 %679 }
 0x292   : > { %v682_v18 = vpop.permute.xlu1 %681  ;;  %v776_v19 = vpop.permute.xlu0 %775 }
 0x293   : > { %v686_v20 = vsel %vm685_vm9, %v680_v14, %v682_v18  ;;  %v687_v21 = vsel %vm685_vm9, %v682_v18, %v684_v13 }
 0x294   : > { %v690_v24 = vadd.f32 %v686_v20, %v619_v22  ;;  %v691_v25 = vadd.f32 %v687_v21, %v620_v23 }
 0x296   : > { %v778_v26 = vpop.permute.xlu1 %777  ;;  %v774_v27 = vpop.permute.xlu0 %773 }
 0x297   : > { %v781_v28 = vsel %vm779_vm10, %v776_v19, %v778_v26  ;;  %v780_v55 = vsel %vm779_vm10, %v774_v27, %v776_v19 }
 0x298   : > { %v785_v29 = vadd.f32 %v781_v28, %v691_v25  ;;  %v784_v30 = vadd.f32 %v780_v55, %v690_v24 }
 0x29a   : > { %v792_v31 = vadd.f32 %v790_v2, %v784_v30  ;;  %v793_v51 = vadd.f32 %v790_v2, %v785_v29  ;;  %v881_v34 = vpop.permute.xlu0 %880 }
 0x29c   : > { %v794_v54 = vmax.f32 %v792_v31, 0.0  ;;  %v795_v32 = vmax.f32 %v793_v51, 0.0 }
 0x29e   : > { %806 = vmatprep.subr.mxu0 %v795_v32  ;;  %v885_v36 = vpop.permute.xlu0 %884 }
 0x29f   : > { %807 = vmatpush1.msra.mxu0 %v794_v54 }
 0x2a0   : > { %1007 = vmatmul.mubr.msk.f32.vlgmr.msra.gmra.mrb[2].mxu0 %vm351_vm1, %v796_v33 }
 0x2a7   : > { %v801_v35 = vpop.permute.xlu1 %800 }
 0x2ab   : > { %v883_v37 = vpop.permute.xlu1 %882 }
 0x2ac   : > { %v887_v43 = vsel %vm577_vm6, %v883_v37, %v885_v36  ;;  %v886_v44 = vsel %vm577_vm6, %v881_v34, %v883_v37 }
 0x373   : > { %v872_v38 = vpop.f32.mrb[2].mxu0 }
 0x374   : > { %v873_v41 = vadd.f32 %v872_v38, %v801_v35  ;;  %v874_v42 = vpop.f32.mrb[3].mxu0 }
 0x375   : > { %v875_v45 = vadd.f32 %v874_v42, %v801_v35 }
 0x376   : > { %v890_v47 = vadd.f32 %v886_v44, %v873_v41 }
 0x377   : > { %v891_v48 = vadd.f32 %v887_v43, %v875_v45 }
 0x378   : > { %v892_v49 = vmax.f32 %v890_v47, 0.0 }
 0x379   : > { %v893_v50 = vmax.f32 %v891_v48, 0.0 }
 0x37a   : > { %894 = vst [vmem:[%s339_s25] sm:$0xff] %v892_v49 }
 0x37b   : > { %895 = vst [vmem:[%s339_s25 + $0x8] sm:$0xff] %v893_v50 }
 0x37c   : > { %1157 = shalt.err (!%p1154_p4)
}
 0x37d   : > { %s1158_s13 = scalar_lea.hbm %s1546_s11, 256  ;;  %s1162_s9 = scalar_lea.hbm %s1603_s8, 512 }
 0x37e   : > { %p1159_p6 = scmp.ne.s32.totalorder %s1546_s11, %s1158_s13  ;;  %p1163_p12 = scmp.lt.u32.totalorder %s1546_s11, %s1603_s8 }
 0x37f   : > { %p1164_p1 = scmp.lt.u32.totalorder %s1162_s9, %s1158_s13  ;;  %p1166_p8 = scmp.lt.u32.totalorder %s1158_s13, %s1546_s11 }
 0x380   : > { %p1160_p7 = pnand %p1159_p6, %p1615_p9 }
 0x381   : > { %p1165_p3 = por %p1164_p1, %p1163_p12 }
 0x382   : > { %p1161_p10 = pneg %p1160_p7 }
 0x383   : > { %p1167_p11 = por %p1166_p8, %p1165_p3 }
 0x385   : > { %p1168_p0 = pnand %p1167_p11, %p1161_p10 }
 0x387   : > { %1171 = shalt.err (!%p1168_p0)
}
 0x388   : > { %1026 = dma.vmem_to_hbm [thread:$0]  (%p1615_p9), %s1548_s23, 256, %s1546_s11, %s897_s14  }
 0x389 PF: > { %s925_s17 = sand.u32 1, %s1206_s27   ;;  %p1616_p5 = scmp.ne.s32.totalorder %s1612_s20, 0 }
 0x38a   : > { %p1617_p13 = scmp.ge.s32.totalorder %s1226_s10, 2  ;;  %s926_s24 = scalar_lea.sflag [#allocation4], %s925_s17 }
 0x38c   : > { %p1033_p2 = pnand %p1617_p13, %p1616_p5 }
 0x38e   : > { %1201 = dma.done.wait (!%p1033_p2), %s926_s24, 256  }
 0x38f   : > { %1203 = vsyncadd (!%p1033_p2), %s926_s24, 4294967040  ;;  %s24_s10 = sadd.s32 1, %s1226_s10   ;;  %s1618_s30 = sld [smem:[#allocation8_spill]] }
 0x390   : > { %p21_p4 = scmp.ge.s32.totalorder %s24_s10, 4   ;;  %s1619_s9 = sld [smem:[#allocation9_spill]] }
 0x391   : > { %s1620_s27 = smov %s1210_s28  ;;  %s1621_s28 = smov %s1214_s29 }
 0x392   : > { %s1622_s29 = smov %s1348_s19  ;;  %23 = sbr.rel (!%p21_p4) target bundleno = 6 (0x6), region = 98 }
 0x399   :  { %931 = vsyncpa [#allocation3], 1 }
 0x39a   :  { %933 = vsyncpa [#allocation3 + $0x1], 1 }
 0x39b   :  { %934 = vsyncpa [#allocation4], 1 }
 0x39c   :  { %936 = vsyncpa [#allocation4 + $0x1], 1 }

</bundles_post_ra>
